<compile_context>
chip_gen: v7x
topology: tpu7x:2x2x1
jax: 0.10.0
libtpu: 0.0.40
codegen_flags: <defaults>
</compile_context>

<pallas_src>
import jax
import jax.numpy as jnp
from jax.experimental import pallas as pl
from jax.experimental.pallas import tpu as pltpu

# ----------------------------------------------------------------------------
# Parameter setup (mirrors SpeciesConverter.__init__) -- deterministic, in-script.
# ----------------------------------------------------------------------------
PERIODIC_TABLE = ["Dummy"] + (
    "H He Li Be B C N O F Ne Na Mg Al Si P S Cl Ar K Ca Sc Ti V Cr Mn Fe Co Ni "
    "Cu Zn Ga Ge As Se Br Kr Rb Sr Y Zr Nb Mo Tc Ru Rh Pd Ag Cd In Sn Sb Te I Xe "
    "Cs Ba La Ce Pr Nd Pm Sm Eu Gd Tb Dy Ho Er Tm Yb Lu Hf Ta W Re Os Ir Pt Au Hg "
    "Tl Pb Bi Po At Rn Fr Ra Ac Th Pa U Np Pu Am Cm Bk Cf Es Fm Md No Lr Rf Db Sg "
    "Bh Hs Mt Ds Rg Cn Nh Fl Mc Lv Ts Og"
).split()

LANES = 128              # lane width (last dim of every block)
SUB = 8                  # sublane tile
MAX_ROW_BLOCK = 512      # 512 x 128 x 4B = 256 KiB int32 per block
SMALL_N_THRESHOLD = 4096 # below this, plain XLA beats the pallas_call fixed cost


def make_conversion(species):
    """Return ((atomic_number, index), ...) pairs for the supported species and the
    torch-style conv_tensor (length maxidx+2, -1 everywhere except supported)."""
    rev_idx = {s: k for k, s in enumerate(PERIODIC_TABLE)}
    maxidx = max(rev_idx.values())
    conv = [-1] * (maxidx + 2)
    pairs = []
    for i, s in enumerate(species):
        z = rev_idx[s]
        conv[z] = i
        pairs.append((z, i))
    return tuple(pairs), jnp.asarray(conv, dtype=jnp.int32)


# ----------------------------------------------------------------------------
# Pallas kernel: unrolled compare/select over the (few) supported species, with a
# fused per-tile "unknown species" flag.
# ----------------------------------------------------------------------------
def _make_kernel(pairs):
    def kernel(sp_ref, out_ref, inv_ref):
        sp = sp_ref[...]                               # (row_block, LANES) int32
        out = jnp.full_like(sp, -1)
        for z, idx in pairs:                           # static unroll, constants baked in
            out = jnp.where(sp == z, jnp.int32(idx), out)
        out_ref[...] = out
        # unknown-species flag: atom is not padding (-1) but matched no supported species
        bad = ((sp != -1) & (out < 0)).astype(jnp.int32)
        flag = jnp.max(bad, axis=1, keepdims=True)     # lane reduce    -> (row_block, 1)
        flag = jnp.max(flag, axis=0, keepdims=True)    # sublane reduce -> (1, 1)
        inv_ref[...] = jnp.broadcast_to(
            flag.reshape((1,) * len(inv_ref.shape)), inv_ref.shape)
    return kernel


def species_converter_forward(pairs, species, coordinates, *, use_pallas=None):
    """species: (B, A) int atomic numbers (-1 padding); coordinates: (B, A, 3) f32."""
    B, A = species.shape
    species = species.astype(jnp.int32)
    n = B * A
    if use_pallas is None:
        use_pallas = n >= SMALL_N_THRESHOLD

    if not use_pallas:
        # Small-input fast path: single fused XLA select chain, no kernel launch.
        out = jnp.full_like(species, -1)
        for z, idx in pairs:
            out = jnp.where(species == z, jnp.int32(idx), out)
        invalid = jnp.any((species != -1) & (out < 0))
        return out, coordinates, invalid

    rows = pl.cdiv(n, LANES)
    # Block rows: multiple of SUB, capped at MAX_ROW_BLOCK, aiming for >= 2 grid
    # steps so v7x's two TensorCores both get work (neutral on v5e/v6e).
    half = pl.cdiv(rows, 2)
    row_block = min(MAX_ROW_BLOCK, max(SUB, pl.cdiv(half, SUB) * SUB))
    num_tiles = pl.cdiv(rows, row_block)
    rows_pad = num_tiles * row_block
    pad = rows_pad * LANES - n

    flat = species.reshape(-1)
    if pad:
        flat = jnp.pad(flat, (0, pad), constant_values=-1)   # tail-only padding
    sp2d = flat.reshape(rows_pad, LANES)

    out2d, flags = pl.pallas_call(
        _make_kernel(pairs),
        out_shape=(
            jax.ShapeDtypeStruct((rows_pad, LANES), jnp.int32),
            jax.ShapeDtypeStruct((num_tiles, SUB, LANES), jnp.int32),  # per-tile flag
        ),
        grid=(num_tiles,),
        in_specs=[pl.BlockSpec((row_block, LANES), lambda i: (i, 0))],
        out_specs=(
            pl.BlockSpec((row_block, LANES), lambda i: (i, 0)),
            pl.BlockSpec((1, SUB, LANES), lambda i: (i, 0, 0)),
        ),
        compiler_params=pltpu.CompilerParams(dimension_semantics=("parallel",)),
    )(sp2d)

    converted = out2d.reshape(-1)[:n].reshape(B, A)
    # TODO(synk): torch raises ValueError on unknown species; a data-dependent raise
    # has no in-kernel equivalent, so callers must check this flag instead.
    invalid = jnp.any(flags != 0)                      # tiny (num_tiles,8,128) array
    return converted, coordinates, invalid


# ----------------------------------------------------------------------------
if __name__ == "__main__":
    key = jax.random.PRNGKey(0)
    k_sp, k_sp2, k_coord, k_coord2 = jax.random.split(key, 4)

    supported = ["H", "C", "N", "O"]
    pairs, conv_tensor = make_conversion(supported)
    tbl_len = conv_tensor.shape[0]

    def reference(sp):  # torch-style gather with negative-index wrapping
        return conv_tensor[jnp.where(sp < 0, sp + tbl_len, sp)]

    # --- test 1: small shape (B=2, A=8), force the Pallas kernel path ---------
    B, A = 2, 8
    choices = jnp.asarray([1, 1, 6, 7, 8], dtype=jnp.int32)  # H, H, C, N, O
    idx = jax.random.randint(k_sp, (B, A), 0, choices.shape[0])
    species = choices[idx]
    species = species.at[0, -2:].set(-1)                      # padded atoms
    species = species.at[1, -1:].set(-1)
    coordinates = jax.random.normal(k_coord, (B, A, 3), dtype=jnp.float32)

    converted, coords_out, invalid = species_converter_forward(
        pairs, species, coordinates, use_pallas=True)
    jax.block_until_ready((converted, coords_out, invalid))
    assert jnp.array_equal(converted, reference(species)), (converted, reference(species))
    assert jnp.array_equal(coords_out, coordinates)
    assert not bool(invalid)

    # --- test 2: multi-tile Pallas path (auto-selected), B=4, A=2048 ----------
    B2, A2 = 4, 2048
    idx2 = jax.random.randint(k_sp2, (B2, A2), 0, choices.shape[0])
    species2 = choices[idx2]
    species2 = species2.at[:, -5:].set(-1)
    coords2 = jax.random.normal(k_coord2, (B2, A2, 3), dtype=jnp.float32)

    converted2, coords2_out, invalid2 = species_converter_forward(pairs, species2, coords2)
    jax.block_until_ready((converted2, coords2_out, invalid2))
    assert jnp.array_equal(converted2, reference(species2))
    assert jnp.array_equal(coords2_out, coords2)
    assert not bool(invalid2)

    # --- test 3: unknown species sets the invalid flag ------------------------
    species3 = species.at[0, 0].set(2)   # He is not in the supported list
    converted3, _, invalid3 = species_converter_forward(
        pairs, species3, coordinates, use_pallas=True)
    jax.block_until_ready((converted3, invalid3))
    assert int(converted3[0, 0]) == -1
    assert bool(invalid3)

    print("KERNEL_OK")
</pallas_src>

<mosaic_0001>
module attributes {stable_mosaic.version = 11 : i64} {
  func.func @kernel(%arg0: i32, %arg1: memref<8x128xi32, #tpu.memory_space<vmem>>, %arg2: memref<8x128xi32, #tpu.memory_space<vmem>>, %arg3: memref<1x8x128xi32, #tpu.memory_space<vmem>>) attributes {dimension_semantics = [#tpu.dimension_semantics<parallel>], iteration_bounds = array<i64: 1>, scalar_prefetch = 0 : i64, scratch_operands = 0 : i64, tpu.core_type = #tpu.core_type<tc>, window_params = [{transform_indices = @transform_0, window_bounds = array<i64: 8, 128>}, {transform_indices = @transform_1, window_bounds = array<i64: 8, 128>}, {transform_indices = @transform_2, window_bounds = array<i64: 1, 8, 128>}]} {
    %c0 = arith.constant 0 : index
    %c0_0 = arith.constant 0 : index
    %0 = vector.load %arg1[%c0, %c0_0] : memref<8x128xi32, #tpu.memory_space<vmem>>, vector<8x128xi32>
    %c-1_i32 = arith.constant -1 : i32
    %1 = vector.broadcast %c-1_i32 : i32 to vector<8x128xi32>
    %c1_i32 = arith.constant 1 : i32
    %2 = vector.broadcast %c1_i32 : i32 to vector<8x128xi32>
    %3 = arith.cmpi eq, %0, %2 : vector<8x128xi32>
    %c0_i32 = arith.constant 0 : i32
    %4 = vector.broadcast %c0_i32 : i32 to vector<8x128xi32>
    %5 = arith.select %3, %4, %1 : vector<8x128xi1>, vector<8x128xi32>
    %c6_i32 = arith.constant 6 : i32
    %6 = vector.broadcast %c6_i32 : i32 to vector<8x128xi32>
    %7 = arith.cmpi eq, %0, %6 : vector<8x128xi32>
    %c1_i32_1 = arith.constant 1 : i32
    %8 = vector.broadcast %c1_i32_1 : i32 to vector<8x128xi32>
    %9 = arith.select %7, %8, %5 : vector<8x128xi1>, vector<8x128xi32>
    %c7_i32 = arith.constant 7 : i32
    %10 = vector.broadcast %c7_i32 : i32 to vector<8x128xi32>
    %11 = arith.cmpi eq, %0, %10 : vector<8x128xi32>
    %c2_i32 = arith.constant 2 : i32
    %12 = vector.broadcast %c2_i32 : i32 to vector<8x128xi32>
    %13 = arith.select %11, %12, %9 : vector<8x128xi1>, vector<8x128xi32>
    %c8_i32 = arith.constant 8 : i32
    %14 = vector.broadcast %c8_i32 : i32 to vector<8x128xi32>
    %15 = arith.cmpi eq, %0, %14 : vector<8x128xi32>
    %c3_i32 = arith.constant 3 : i32
    %16 = vector.broadcast %c3_i32 : i32 to vector<8x128xi32>
    %17 = arith.select %15, %16, %13 : vector<8x128xi1>, vector<8x128xi32>
    %c0_2 = arith.constant 0 : index
    %c0_3 = arith.constant 0 : index
    %18 = vector.load %arg2[%c0_2, %c0_3] : memref<8x128xi32, #tpu.memory_space<vmem>>, vector<8x128xi32>
    tpu.vector_store %arg2[%c0_2, %c0_3], %17 {strides = array<i32>} : memref<8x128xi32, #tpu.memory_space<vmem>>, vector<8x128xi32>,
    %c-1_i32_4 = arith.constant -1 : i32
    %19 = vector.broadcast %c-1_i32_4 : i32 to vector<8x128xi32>
    %20 = arith.cmpi ne, %0, %19 : vector<8x128xi32>
    %c0_i32_5 = arith.constant 0 : i32
    %21 = vector.broadcast %c0_i32_5 : i32 to vector<8x128xi32>
    %22 = arith.cmpi slt, %17, %21 : vector<8x128xi32>
    %23 = arith.andi %20, %22 : vector<8x128xi1>
    %24 = arith.extui %23 : vector<8x128xi1> to vector<8x128xi32>
    %cst = arith.constant dense<-2147483648> : vector<8xi32>
    %25 = vector.multi_reduction <maxsi>, %24, %cst [1] : vector<8x128xi32> to vector<8xi32>
    %26 = vector.shape_cast %25 : vector<8xi32> to vector<8x1xi32>
    %cst_6 = arith.constant dense<-2147483648> : vector<1xi32>
    %27 = vector.multi_reduction <maxsi>, %26, %cst_6 [0] : vector<8x1xi32> to vector<1xi32>
    %28 = vector.shape_cast %27 : vector<1xi32> to vector<1x1xi32>
    %29 = vector.shape_cast %28 : vector<1x1xi32> to vector<1x1x1xi32>
    %30 = vector.shape_cast %29 : vector<1x1x1xi32> to vector<1x1x1xi32>
    %31 = vector.broadcast %30 : vector<1x1x1xi32> to vector<1x8x128xi32>
    %c0_7 = arith.constant 0 : index
    %c0_8 = arith.constant 0 : index
    %c0_9 = arith.constant 0 : index
    %32 = vector.load %arg3[%c0_7, %c0_8, %c0_9] : memref<1x8x128xi32, #tpu.memory_space<vmem>>, vector<1x8x128xi32>
    tpu.vector_store %arg3[%c0_7, %c0_8, %c0_9], %31 {strides = array<i32>} : memref<1x8x128xi32, #tpu.memory_space<vmem>>, vector<1x8x128xi32>,
    return
  }
  func.func @transform_0(%arg0: i32) -> (i32, i32) {
    %c0_i32 = arith.constant 0 : i32
    %c0_i32_0 = arith.constant 0 : i32
    return %arg0, %c0_i32 : i32, i32
  }
  func.func @transform_1(%arg0: i32) -> (i32, i32) {
    %c0_i32 = arith.constant 0 : i32
    %c0_i32_0 = arith.constant 0 : i32
    return %arg0, %c0_i32 : i32, i32
  }
  func.func @transform_2(%arg0: i32) -> (i32, i32, i32) {
    %c0_i32 = arith.constant 0 : i32
    %c0_i32_0 = arith.constant 0 : i32
    %c0_i32_1 = arith.constant 0 : i32
    return %arg0, %c0_i32, %c0_i32_0 : i32, i32, i32
  }
}

</mosaic_0001>

<bundles_post_ra>
// kernel: tpu_custom_call.1
= control target key start
LH: loop header
LB: loop body
LE: loop exit
PB: predicated region body
PF: predicated region fallthrough
CT: control target
= control target key end

     0   :  { %8 = vsyncpa [#allocation3], 0  ;;  %s224_s0 = inlined_call_operand.hbm [shape: s32[8,128], index: 0, kind: input, shape index: {}]   ;;  %s225_s1 = inlined_call_operand.hbm [shape: s32[8,128], index: 1, kind: output, shape index: {0}]   ;;  %s226_s2 = inlined_call_operand.hbm [shape: s32[1,8,128], index: 2, kind: output, shape index: {1}]  }
   0x1   :  { %9 = vsyncpa [#allocation4], 0 }
   0x2   :  { %10 = vsyncpa [#allocation7], 0  ;;  %s168_s9 = smov [#allocation2]   ;;  %s96_s13 = scalar_lea.hbm %s224_s0, 128 }
   0x3   :  { %s17_s10 = sshll.u32 %s168_s9, 4  ;;  %p97_p0 = scmp.ne.s32.totalorder %s224_s0, %s96_s13  ;;  %s18_s10 = int_to_ptr.vmem [resolvable:$true] %s17_s10 }
   0x4   :  { %p100_p1 = scmp.lt.u32.totalorder %s96_s13, %s224_s0 }
   0x6   :  { %p102_p2 = pnand %p100_p1, %p97_p0 }
   0x8   :  { %105 = shalt.err (!%p102_p2)
}
   0x9   :  { %s106_s18 = scalar_lea.vmem %s18_s10, 128  ;;  %p111_p4 = scmp.lt.s32.totalorder %s18_s10, %s18_s10 }
   0xa   :  { %p107_p3 = scmp.ne.s32.totalorder %s18_s10, %s106_s18  ;;  %p112_p5 = scmp.lt.s32.totalorder %s106_s18, %s106_s18 }
   0xc   :  { %p113_p6 = por %p112_p5, %p111_p4 }
   0xe   :  { %p114_p7 = pnand %p113_p6, %p107_p3 }
  0x10   :  { %117 = shalt.err (!%p114_p7)
}
  0x11   :  { %20 = dma.hbm_to_vmem [thread:$0]  %s224_s0, 128, %s18_s10, [#allocation3]  }
  0x12   :  { %162 = dma.done.wait [#allocation3], 128  }
  0x13   :  { %163 = vsyncadd [#allocation3], 4294967168  ;;  %v24_v0 = vld [vmem:[#allocation2] sm:$0xff]  ;;  %v169_v1 = vmov 4294967295   ;;  %v170_v6 = vmov 0   ;;  %s171_s0 = smov [#allocation5]  }
  0x14   :  { %vm25_vm0 = vcmp.eq.s32.totalorder %v24_v0, 1  ;;  %vm27_vm1 = vcmp.eq.s32.totalorder %v24_v0, 6  ;;  %vm29_vm2 = vcmp.eq.s32.totalorder %v24_v0, 7  ;;  %vm31_vm3 = vcmp.eq.s32.totalorder %v24_v0, 8  ;;  %s68_s21 = sshll.u32 %s171_s0, 4  ;;  %s69_s21 = int_to_ptr.vmem [resolvable:$true] %s68_s21 }
  0x15   :  { %v26_v2 = vsel %vm25_vm0, 0, %v169_v1  ;;  %vm34_vm4 = vcmp.ne.s32.totalorder %v24_v0, 4294967295  ;;  %s118_s22 = scalar_lea.vmem %s69_s21, 128  ;;  %p123_p9 = scmp.lt.s32.totalorder %s69_s21, %s69_s21 }
  0x16   :  { %v28_v3 = vsel %vm27_vm1, 1, %v26_v2  ;;  %p119_p8 = scmp.ne.s32.totalorder %s69_s21, %s118_s22  ;;  %p124_p10 = scmp.lt.s32.totalorder %s118_s22, %s118_s22 }
  0x17   :  { %v30_v4 = vsel %vm29_vm2, 2, %v28_v3 }
  0x18   :  { %v32_v5 = vsel %vm31_vm3, 3, %v30_v4  ;;  %p125_p11 = por %p124_p10, %p123_p9 }
  0x19   :  { %vm35_vm5 = vcmp.lt.s32.totalorder %v32_v5, 0  ;;  %33 = vst [vmem:[#allocation5] sm:$0xff] %v32_v5 }
  0x1a   :  { %vm36_vm6 = vmand %vm34_vm4, %vm35_vm5  ;;  %p126_p12 = pnand %p125_p11, %p119_p8 }
  0x1b   :  { %v37_v7 = vsel %vm36_vm6, 1, %v170_v6 }
  0x1c   :  { %v39_v8 = vshra.s32 %v37_v7, 16  ;;  %v38_v10 = vand.u32 65535, %v37_v7 }
  0x1e   :  { %v41_v9 = vcvt.s32.f32 %v39_v8  ;;  %v40_v11 = vcvt.s32.f32 %v38_v10 }
  0x20   :  { %42 = vmax.xlane.f32.xlu0 %v41_v9 }
  0xad   :  { %v43_v12 = vpop.xlane.xlu0 %42 }
  0xae   :  { %vm44_vm7 = vcmp.eq.f32.partialorder %v41_v9, %v43_v12 }
  0xaf   :  { %v45_v13 = vsel %vm44_vm7, %v40_v11, -inf }
  0xb0   :  { %46 = vmax.xlane.f32.xlu0 %v45_v13 }
  0xb1   :  { %129 = shalt.err (!%p126_p12)
}
  0xb2   :  { %s130_s25 = scalar_lea.hbm %s225_s1, 128 }
  0xb3   :  { %p131_p13 = scmp.ne.s32.totalorder %s225_s1, %s130_s25  ;;  %p134_p0 = scmp.lt.u32.totalorder %s130_s25, %s225_s1 }
  0xb5   :  { %p136_p1 = pnand %p134_p0, %p131_p13 }
  0xb7   :  { %139 = shalt.err (!%p136_p1)
}
  0xb8   :  { %71 = dma.vmem_to_hbm [thread:$0]  %s69_s21, 128, %s225_s1, [#allocation4]   ;;  %v49_v14 = vcvt.f32.s32 %v43_v12 }
  0xb9   :  { %s172_s4 = smov [#allocation6]  }
  0xba   :  { %v50_v16 = vshll.u32 %v49_v14, 16  ;;  %s78_s5 = sshll.u32 %s172_s4, 4  ;;  %s79_s5 = int_to_ptr.vmem [resolvable:$true] %s78_s5 }
  0xbb   :  { %s140_s6 = scalar_lea.vmem %s79_s5, 128  ;;  %p145_p3 = scmp.lt.s32.totalorder %s79_s5, %s79_s5 }
  0xbc   :  { %p141_p2 = scmp.ne.s32.totalorder %s79_s5, %s140_s6  ;;  %p146_p4 = scmp.lt.s32.totalorder %s140_s6, %s140_s6 }
  0xbe   :  { %p147_p5 = por %p146_p4, %p145_p3 }
  0xc0   :  { %p148_p6 = pnand %p147_p5, %p141_p2 }
 0x13d   :  { %v47_v15 = vpop.xlane.xlu0 %46 }
 0x13e   :  { %v48_v17 = vcvt.f32.s32 %v47_v15 }
 0x140   :  { %v51_v18 = vadd.s32 %v50_v16, %v48_v17 }
 0x142   :  { %v52_v19 = vrot.slane %v51_v18, 4 }
 0x144   :  { %vm53_vm8 = vcmp.gt.s32.totalorder %v51_v18, %v52_v19 }
 0x145   :  { %v54_v20 = vsel %vm53_vm8, %v51_v18, %v52_v19 }
 0x146   :  { %v55_v21 = vrot.slane %v54_v20, 2 }
 0x148   :  { %vm56_vm9 = vcmp.gt.s32.totalorder %v54_v20, %v55_v21 }
 0x149   :  { %v57_v22 = vsel %vm56_vm9, %v54_v20, %v55_v21 }
 0x14a   :  { %v58_v23 = vrot.slane %v57_v22, 1 }
 0x14c   :  { %vm59_vm10 = vcmp.gt.s32.totalorder %v57_v22, %v58_v23 }
 0x14d   :  { %v60_v24 = vsel %vm59_vm10, %v57_v22, %v58_v23 }
 0x14e   :  { %61 = vst [vmem:[#allocation6] sm:$0xff] %v60_v24 }
 0x14f   :  { %151 = shalt.err (!%p148_p6)
}
 0x150   :  { %s152_s8 = scalar_lea.hbm %s226_s2, 128 }
 0x151   :  { %p153_p7 = scmp.ne.s32.totalorder %s226_s2, %s152_s8  ;;  %p156_p8 = scmp.lt.u32.totalorder %s152_s8, %s226_s2 }
 0x153   :  { %p158_p9 = pnand %p156_p8, %p153_p7 }
 0x155   :  { %161 = shalt.err (!%p158_p9)
}
 0x156   :  { %81 = dma.vmem_to_hbm [thread:$0]  %s79_s5, 128, %s226_s2, [#allocation7]  }
 0x157   :  { %164 = dma.done.wait [#allocation4], 128  }
 0x158   :  { %165 = vsyncadd [#allocation4], 4294967168 }
 0x159   :  { %166 = dma.done.wait [#allocation7], 128  }
 0x15a   :  { %167 = vsyncadd [#allocation7], 4294967168 }
 0x15b   :  { %88 = vsyncpa [#allocation3], 1 }
 0x15c   :  { %89 = vsyncpa [#allocation4], 1 }
 0x15d   :  { %90 = vsyncpa [#allocation7], 1 }

</bundles_post_ra>
